<compile_context>
chip_gen: v7x
topology: tpu7x:2x2x1
jax: 0.10.0
libtpu: 0.0.40
codegen_flags: <defaults>
</compile_context>

<pallas_src>
import functools

import jax
import jax.numpy as jnp
from jax import lax
from jax.experimental import pallas as pl
from jax.experimental.pallas import tpu as pltpu

CHUNK = 8  # f32 sublane count: inner static-unroll length / time granule


def _round_up(n, m):
    return ((n + m - 1) // m) * m


def _vmem_block_bytes(tb, bb, ip, hp):
    """Rough f32 VMEM footprint of one grid step: double-buffered pipeline
    blocks + resident weights + in-body temporaries."""
    x_blk = 2 * tb * bb * ip             # x block (double-buffered)
    o_blk = 2 * tb * bb * hp             # out block (double-buffered)
    wgt = 2 * (ip * hp + hp * hp + hp)   # Wx, Wh, bias
    state = 8 * bb * hp                  # h0, c0, hn, cn blocks
    tmp = 6 * bb * CHUNK * hp            # zx chunk + gate temporaries
    return 4 * (x_blk + o_blk + wgt + state + tmp)


def lstm_kernel(x_ref, wx_ref, wh_ref, b_ref, h0_ref, c0_ref,
                out_ref, hn_ref, cn_ref, *, seq_len, mask_tail):
    """One (batch block, time block) grid step.

    Kernel-internal layout is time-major: x_ref (Tb, Bb, Ip), out_ref
    (Tb, Bb, Hp), so every per-step access is a full (8,128)-tile slab.
    """
    ti = pl.program_id(1)

    # hn/cn have a time-invariant index_map -> resident in VMEM across the
    # whole time sweep; they double as the (h, c) carry.
    @pl.when(ti == 0)
    def _():
        hn_ref[...] = h0_ref[...]
        cn_ref[...] = c0_ref[...]

    Tb, Bb, _ = x_ref.shape
    Ip = wx_ref.shape[0]
    n_chunks = Tb // CHUNK

    bias = b_ref[...]            # (1, Hp): tiny, hoisted out of the loop
    t_base = ti * Tb             # first global timestep of this block

    def chunk_body(ci, carry):
        h, c = carry
        t0 = pl.multiple_of(ci * CHUNK, CHUNK)

        # Input projection for the whole chunk as ONE MXU matmul with
        # M = CHUNK * Bb rows (bias folded in once).  Only the small
        # h @ Wh matmul below stays on the serial critical path.
        xc = x_ref[pl.ds(t0, CHUNK), :, :]                    # (CHUNK, Bb, Ip)
        zx = jnp.dot(xc.reshape(CHUNK * Bb, Ip), wx_ref[...],
                     preferred_element_type=jnp.float32) + bias

        # Serial recurrence: static 8-step unroll inside a visible fori_loop
        # (bounded live ranges; no vreg spill at large Bb).
        for j in range(CHUNK):
            z = zx[j * Bb:(j + 1) * Bb, :] + jnp.dot(
                h.astype(wh_ref.dtype), wh_ref[...],
                preferred_element_type=jnp.float32)
            g = jax.nn.sigmoid(z)        # shared gate: f == i == o
            c_tilde = jnp.tanh(z)
            c_new = g * (h + c_tilde)    # reference cell uses h_prev, not c_prev
            h_new = jnp.tanh(c_new) * g
            if mask_tail:
                # Freeze the carry on zero-padded tail timesteps so hn/cn are
                # the state after exactly `seq_len` real steps.
                valid = (t_base + t0 + j) < seq_len
                h = jnp.where(valid, h_new, h)
                c = jnp.where(valid, c_new, c)
            else:
                h, c = h_new, c_new
            # Full-tile, lane-dense store: one (Bb, Hp) slab per step.
            out_ref[t0 + j, :, :] = h.astype(out_ref.dtype)
        return h, c

    h, c = lax.fori_loop(0, n_chunks, chunk_body, (hn_ref[...], cn_ref[...]))
    hn_ref[...] = h
    cn_ref[...] = c


def lstm_forward(x, states, Wx, Wh, b, *, batch_block_target=128,
                 max_time_block=32, param_dtype=jnp.float32):
    """x: (B, T, I); states = (h0, c0), each (1, B, H).
    Wx: (I, H), Wh: (H, H), b: (1, H)  (already-transposed gate weights).

    batch_block_target: MXU row target for the recurrent matmul (128 fills the
      v5e MXU; use 256 on v6e/v7x when B is large enough).
    param_dtype: storage dtype for x / Wx / Wh.  bf16 on v6e/v7x halves weight
      VMEM/HBM traffic and ~doubles MXU throughput (f32 accumulation is kept);
      f32 here so the 1e-2 validation against the f32 reference is tight.
    """
    h0, c0 = states
    B, T, I = x.shape
    H = Wh.shape[1]
    f32 = jnp.float32

    # TPU-native padding: lanes (128) on I/H, sublanes (8) on batch and time.
    Ip = _round_up(I, 128)
    Hp = _round_up(H, 128)
    Bp = _round_up(B, 8)
    Bb = min(Bp, _round_up(batch_block_target, 8))
    Bp = _round_up(Bp, Bb)                       # make Bb divide Bp
    Tp = _round_up(max(T, 1), CHUNK)

    # Time block: largest multiple-of-8 divisor of Tp that fits the VMEM
    # budget (keeps the tiling inside v7x's 64 MiB as well as v5e/v6e).
    budget = 40 * 1024 * 1024
    Tb = CHUNK
    for cand in range(CHUNK, min(max(max_time_block, CHUNK), Tp) + 1, CHUNK):
        if Tp % cand == 0 and _vmem_block_bytes(cand, Bb, Ip, Hp) <= budget:
            Tb = cand
    vmem_limit = int(min(64 * 1024 * 1024,
                         max(32 * 1024 * 1024,
                             2 * _vmem_block_bytes(Tb, Bb, Ip, Hp))))

    # Zero-padded, time-major operands.  Pad lanes/rows provably stay zero in
    # the recurrence (Wx/Wh/b pad rows & cols are zero); pad batch rows and
    # tail timesteps are sliced/frozen, so padding never leaks into results.
    xp = jnp.zeros((Tp, Bp, Ip), param_dtype)
    xp = xp.at[:T, :B, :I].set(jnp.transpose(x, (1, 0, 2)).astype(param_dtype))
    Wxp = jnp.zeros((Ip, Hp), param_dtype).at[:I, :H].set(Wx.astype(param_dtype))
    Whp = jnp.zeros((Hp, Hp), param_dtype).at[:H, :H].set(Wh.astype(param_dtype))
    bp = jnp.zeros((1, Hp), f32).at[:, :H].set(b.astype(f32))
    h0p = jnp.zeros((Bp, Hp), f32).at[:B, :H].set(h0[0].astype(f32))
    c0p = jnp.zeros((Bp, Hp), f32).at[:B, :H].set(c0[0].astype(f32))

    grid = (Bp // Bb, Tp // Tb)
    kernel = functools.partial(lstm_kernel, seq_len=T, mask_tail=(Tp != T))

    # Weight/bias/state specs use constant index_maps -> DMA'd once, resident
    # across the sequential time axis.  (For very large Hp they could also be
    # single-buffered via pipeline_mode to halve their VMEM footprint.)
    out_p, hn_p, cn_p = pl.pallas_call(
        kernel,
        out_shape=(
            jax.ShapeDtypeStruct((Tp, Bp, Hp), f32),
            jax.ShapeDtypeStruct((Bp, Hp), f32),
            jax.ShapeDtypeStruct((Bp, Hp), f32),
        ),
        grid_spec=pltpu.PrefetchScalarGridSpec(
            num_scalar_prefetch=0,
            grid=grid,
            in_specs=[
                pl.BlockSpec((Tb, Bb, Ip), lambda bi, ti: (ti, bi, 0)),
                pl.BlockSpec((Ip, Hp), lambda bi, ti: (0, 0)),
                pl.BlockSpec((Hp, Hp), lambda bi, ti: (0, 0)),
                pl.BlockSpec((1, Hp), lambda bi, ti: (0, 0)),
                pl.BlockSpec((Bb, Hp), lambda bi, ti: (bi, 0)),
                pl.BlockSpec((Bb, Hp), lambda bi, ti: (bi, 0)),
            ],
            out_specs=[
                pl.BlockSpec((Tb, Bb, Hp), lambda bi, ti: (ti, bi, 0)),
                # hn/cn: time-invariant index -> resident carry across ti,
                # written back to HBM only when the batch block changes / ends.
                pl.BlockSpec((Bb, Hp), lambda bi, ti: (bi, 0)),
                pl.BlockSpec((Bb, Hp), lambda bi, ti: (bi, 0)),
            ],
        ),
        compiler_params=pltpu.CompilerParams(
            # batch blocks are independent (v7x megacore); time is sequential.
            dimension_semantics=("parallel", "arbitrary"),
            vmem_limit_bytes=vmem_limit),
    )(xp, Wxp, Whp, bp, h0p, c0p)

    out = jnp.transpose(out_p[:T, :B, :H], (1, 0, 2))
    hn = hn_p[:B, :H][None]
    cn = cn_p[:B, :H][None]
    return out, (hn, cn)


def lstm_reference(x, states, Wx, Wh, b):
    """Pure-JAX replica of the PyTorch forward for validation."""
    h0, c0 = states
    h = h0[0]
    c = c0[0]
    outs = []
    for s in range(x.shape[1]):
        z = x[:, s, :] @ Wx + h @ Wh + b
        g = jax.nn.sigmoid(z)
        c_tilde = jnp.tanh(z)
        c = h * g + c_tilde * g
        h = jnp.tanh(c) * g
        outs.append(h)
    return jnp.stack(outs, 1), (h[None], c[None])


if __name__ == "__main__":
    B, T, I, H = 2, 8, 16, 32

    key = jax.random.PRNGKey(0)
    k_x, k_h, k_c, k_w, k_b = jax.random.split(key, 5)

    x = jax.random.normal(k_x, (B, T, I), dtype=jnp.float32)
    h0 = jax.random.normal(k_h, (1, B, H), dtype=jnp.float32)
    c0 = jax.random.normal(k_c, (1, B, H), dtype=jnp.float32)

    # gate = nn.Linear(I + H, H): weight (H, I+H), bias (H,); deterministic init.
    bound = 1.0 / jnp.sqrt(jnp.float32(I + H))
    W = jax.random.uniform(k_w, (H, I + H), jnp.float32, -bound, bound)
    b_vec = jax.random.uniform(k_b, (H,), jnp.float32, -bound, bound)
    Wx = jnp.transpose(W[:, :I])        # (I, H)
    Wh = jnp.transpose(W[:, I:])        # (H, H)
    b = b_vec[None, :]                  # (1, H)

    out, (hn, cn) = jax.jit(lstm_forward)(x, (h0, c0), Wx, Wh, b)
    jax.block_until_ready((out, hn, cn))

    out_ref, (hn_ref, cn_ref) = lstm_reference(x, (h0, c0), Wx, Wh, b)
    assert out.shape == (B, T, H)
    assert hn.shape == (1, B, H) and cn.shape == (1, B, H)
    # Tolerance covers the MXU's default-precision handling of f32 matmuls
    # (bf16 passes) which may differ between the Pallas kernel and the XLA
    # reference; structural/semantic errors would be O(0.1 - 1).
    assert jnp.allclose(out, out_ref, atol=1e-2, rtol=1e-2)
    assert jnp.allclose(hn, hn_ref, atol=1e-2, rtol=1e-2)
    assert jnp.allclose(cn, cn_ref, atol=1e-2, rtol=1e-2)

    print("KERNEL_OK")
</pallas_src>

<mosaic_0001>
module attributes {stable_mosaic.version = 11 : i64} {
  func.func @lstm_kernel(%arg0: i32, %arg1: i32, %arg2: memref<8x8x128xf32, #tpu.memory_space<vmem>>, %arg3: memref<128x128xf32, #tpu.memory_space<vmem>>, %arg4: memref<128x128xf32, #tpu.memory_space<vmem>>, %arg5: memref<1x128xf32, #tpu.memory_space<vmem>>, %arg6: memref<8x128xf32, #tpu.memory_space<vmem>>, %arg7: memref<8x128xf32, #tpu.memory_space<vmem>>, %arg8: memref<8x8x128xf32, #tpu.memory_space<vmem>>, %arg9: memref<8x128xf32, #tpu.memory_space<vmem>>, %arg10: memref<8x128xf32, #tpu.memory_space<vmem>>) attributes {dimension_semantics = [#tpu.dimension_semantics<parallel>, #tpu.dimension_semantics<arbitrary>], iteration_bounds = array<i64: 1, 1>, scalar_prefetch = 0 : i64, scratch_operands = 0 : i64, tpu.core_type = #tpu.core_type<tc>, window_params = [{transform_indices = @transform_0, window_bounds = array<i64: 8, 8, 128>}, {pipeline_mode = #tpu.pipeline_mode<synchronous>, transform_indices = @transform_1, window_bounds = array<i64: 128, 128>}, {pipeline_mode = #tpu.pipeline_mode<synchronous>, transform_indices = @transform_2, window_bounds = array<i64: 128, 128>}, {pipeline_mode = #tpu.pipeline_mode<synchronous>, transform_indices = @transform_3, window_bounds = array<i64: 1, 128>}, {transform_indices = @transform_4, window_bounds = array<i64: 8, 128>}, {transform_indices = @transform_5, window_bounds = array<i64: 8, 128>}, {transform_indices = @transform_6, window_bounds = array<i64: 8, 8, 128>}, {transform_indices = @transform_7, window_bounds = array<i64: 8, 128>}, {transform_indices = @transform_8, window_bounds = array<i64: 8, 128>}]} {
    %c0_i32 = arith.constant 0 : i32
    %0 = arith.cmpi eq, %arg1, %c0_i32 : i32
    %1 = arith.extui %0 : i1 to i32
    %c0_i32_0 = arith.constant 0 : i32
    %2 = arith.cmpi ne, %1, %c0_i32_0 : i32
    scf.if %2 {
      %c0_65 = arith.constant 0 : index
      %c0_66 = arith.constant 0 : index
      %169 = vector.load %arg6[%c0_65, %c0_66] : memref<8x128xf32, #tpu.memory_space<vmem>>, vector<8x128xf32>
      %c0_67 = arith.constant 0 : index
      %c0_68 = arith.constant 0 : index
      %170 = vector.load %arg9[%c0_67, %c0_68] : memref<8x128xf32, #tpu.memory_space<vmem>>, vector<8x128xf32>
      tpu.vector_store %arg9[%c0_67, %c0_68], %169 {strides = array<i32>} : memref<8x128xf32, #tpu.memory_space<vmem>>, vector<8x128xf32>,
      %c0_69 = arith.constant 0 : index
      %c0_70 = arith.constant 0 : index
      %171 = vector.load %arg7[%c0_69, %c0_70] : memref<8x128xf32, #tpu.memory_space<vmem>>, vector<8x128xf32>
      %c0_71 = arith.constant 0 : index
      %c0_72 = arith.constant 0 : index
      %172 = vector.load %arg10[%c0_71, %c0_72] : memref<8x128xf32, #tpu.memory_space<vmem>>, vector<8x128xf32>
      tpu.vector_store %arg10[%c0_71, %c0_72], %171 {strides = array<i32>} : memref<8x128xf32, #tpu.memory_space<vmem>>, vector<8x128xf32>,
    } else {
    }
    %c0 = arith.constant 0 : index
    %c0_1 = arith.constant 0 : index
    %3 = vector.load %arg5[%c0, %c0_1] : memref<1x128xf32, #tpu.memory_space<vmem>>, vector<1x128xf32>
    %c0_2 = arith.constant 0 : index
    %c0_3 = arith.constant 0 : index
    %4 = vector.load %arg9[%c0_2, %c0_3] : memref<8x128xf32, #tpu.memory_space<vmem>>, vector<8x128xf32>
    %c0_4 = arith.constant 0 : index
    %c0_5 = arith.constant 0 : index
    %5 = vector.load %arg10[%c0_4, %c0_5] : memref<8x128xf32, #tpu.memory_space<vmem>>, vector<8x128xf32>
    %c0_i32_6 = arith.constant 0 : i32
    %c8_i32 = arith.constant 8 : i32
    %6 = arith.muli %c0_i32_6, %c8_i32 : i32
    %7 = tpu.assume_multiple %6, 8 : i32
    %8 = arith.index_cast %7 : i32 to index
    %c0_7 = arith.constant 0 : index
    %c0_8 = arith.constant 0 : index
    %9 = vector.load %arg2[%8, %c0_7, %c0_8] : memref<8x8x128xf32, #tpu.memory_space<vmem>>, vector<8x8x128xf32>
    %10 = vector.shape_cast %9 : vector<8x8x128xf32> to vector<64x128xf32>
    %c0_9 = arith.constant 0 : index
    %c0_10 = arith.constant 0 : index
    %11 = vector.load %arg3[%c0_9, %c0_10] : memref<128x128xf32, #tpu.memory_space<vmem>>, vector<128x128xf32>
    %cst = arith.constant dense<0.000000e+00> : vector<64x128xf32>
    %12 = tpu.matmul %10, %11, %cst {dimension_numbers = #tpu.dot_dimension_numbers<[1], [0], [0], [1], [0, 0, 1, 1], [], []>} : vector<64x128xf32>, vector<128x128xf32>, vector<64x128xf32> -> vector<64x128xf32>
    %13 = vector.broadcast %3 : vector<1x128xf32> to vector<64x128xf32>
    %14 = arith.addf %12, %13 : vector<64x128xf32>
    %15 = vector.extract_strided_slice %14 {offsets = [0, 0], sizes = [8, 128], strides = [1, 1]} : vector<64x128xf32> to vector<8x128xf32>
    %c0_11 = arith.constant 0 : index
    %c0_12 = arith.constant 0 : index
    %16 = vector.load %arg4[%c0_11, %c0_12] : memref<128x128xf32, #tpu.memory_space<vmem>>, vector<128x128xf32>
    %cst_13 = arith.constant dense<0.000000e+00> : vector<8x128xf32>
    %17 = tpu.matmul %4, %16, %cst_13 {dimension_numbers = #tpu.dot_dimension_numbers<[1], [0], [0], [1], [0, 0, 1, 1], [], []>} : vector<8x128xf32>, vector<128x128xf32>, vector<8x128xf32> -> vector<8x128xf32>
    %18 = arith.addf %15, %17 : vector<8x128xf32>
    %19 = arith.negf %18 : vector<8x128xf32>
    %20 = math.exp %19 : vector<8x128xf32>
    %cst_14 = arith.constant 1.000000e+00 : f32
    %21 = vector.broadcast %cst_14 : f32 to vector<8x128xf32>
    %22 = arith.addf %21, %20 : vector<8x128xf32>
    %23 = arith.divf %21, %22 : vector<8x128xf32>
    %24 = math.tanh %18 : vector<8x128xf32>
    %25 = arith.addf %4, %24 : vector<8x128xf32>
    %26 = arith.mulf %23, %25 : vector<8x128xf32>
    %27 = math.tanh %26 : vector<8x128xf32>
    %28 = arith.mulf %27, %23 : vector<8x128xf32>
    %c0_i32_15 = arith.constant 0 : i32
    %29 = arith.addi %7, %c0_i32_15 : i32
    %30 = arith.index_cast %29 : i32 to index
    %c0_16 = arith.constant 0 : index
    %c0_17 = arith.constant 0 : index
    %31 = vector.load %arg8[%30, %c0_16, %c0_17] : memref<8x8x128xf32, #tpu.memory_space<vmem>>, vector<1x8x128xf32>
    %32 = vector.shape_cast %31 : vector<1x8x128xf32> to vector<8x128xf32>
    %33 = vector.shape_cast %28 : vector<8x128xf32> to vector<1x8x128xf32>
    tpu.vector_store %arg8[%30, %c0_16, %c0_17], %33 {strides = array<i32>} : memref<8x8x128xf32, #tpu.memory_space<vmem>>, vector<1x8x128xf32>,
    %34 = vector.extract_strided_slice %14 {offsets = [8, 0], sizes = [8, 128], strides = [1, 1]} : vector<64x128xf32> to vector<8x128xf32>
    %c0_18 = arith.constant 0 : index
    %c0_19 = arith.constant 0 : index
    %35 = vector.load %arg4[%c0_18, %c0_19] : memref<128x128xf32, #tpu.memory_space<vmem>>, vector<128x128xf32>
    %cst_20 = arith.constant dense<0.000000e+00> : vector<8x128xf32>
    %36 = tpu.matmul %28, %35, %cst_20 {dimension_numbers = #tpu.dot_dimension_numbers<[1], [0], [0], [1], [0, 0, 1, 1], [], []>} : vector<8x128xf32>, vector<128x128xf32>, vector<8x128xf32> -> vector<8x128xf32>
    %37 = arith.addf %34, %36 : vector<8x128xf32>
    %38 = arith.negf %37 : vector<8x128xf32>
    %39 = math.exp %38 : vector<8x128xf32>
    %cst_21 = arith.constant 1.000000e+00 : f32
    %40 = vector.broadcast %cst_21 : f32 to vector<8x128xf32>
    %41 = arith.addf %40, %39 : vector<8x128xf32>
    %42 = arith.divf %40, %41 : vector<8x128xf32>
    %43 = math.tanh %37 : vector<8x128xf32>
    %44 = arith.addf %28, %43 : vector<8x128xf32>
    %45 = arith.mulf %42, %44 : vector<8x128xf32>
    %46 = math.tanh %45 : vector<8x128xf32>
    %47 = arith.mulf %46, %42 : vector<8x128xf32>
    %c1_i32 = arith.constant 1 : i32
    %48 = arith.addi %7, %c1_i32 : i32
    %49 = arith.index_cast %48 : i32 to index
    %c0_22 = arith.constant 0 : index
    %c0_23 = arith.constant 0 : index
    %50 = vector.load %arg8[%49, %c0_22, %c0_23] : memref<8x8x128xf32, #tpu.memory_space<vmem>>, vector<1x8x128xf32>
    %51 = vector.shape_cast %50 : vector<1x8x128xf32> to vector<8x128xf32>
    %52 = vector.shape_cast %47 : vector<8x128xf32> to vector<1x8x128xf32>
    tpu.vector_store %arg8[%49, %c0_22, %c0_23], %52 {strides = array<i32>} : memref<8x8x128xf32, #tpu.memory_space<vmem>>, vector<1x8x128xf32>,
    %53 = vector.extract_strided_slice %14 {offsets = [16, 0], sizes = [8, 128], strides = [1, 1]} : vector<64x128xf32> to vector<8x128xf32>
    %c0_24 = arith.constant 0 : index
    %c0_25 = arith.constant 0 : index
    %54 = vector.load %arg4[%c0_24, %c0_25] : memref<128x128xf32, #tpu.memory_space<vmem>>, vector<128x128xf32>
    %cst_26 = arith.constant dense<0.000000e+00> : vector<8x128xf32>
    %55 = tpu.matmul %47, %54, %cst_26 {dimension_numbers = #tpu.dot_dimension_numbers<[1], [0], [0], [1], [0, 0, 1, 1], [], []>} : vector<8x128xf32>, vector<128x128xf32>, vector<8x128xf32> -> vector<8x128xf32>
    %56 = arith.addf %53, %55 : vector<8x128xf32>
    %57 = arith.negf %56 : vector<8x128xf32>
    %58 = math.exp %57 : vector<8x128xf32>
    %cst_27 = arith.constant 1.000000e+00 : f32
    %59 = vector.broadcast %cst_27 : f32 to vector<8x128xf32>
    %60 = arith.addf %59, %58 : vector<8x128xf32>
    %61 = arith.divf %59, %60 : vector<8x128xf32>
    %62 = math.tanh %56 : vector<8x128xf32>
    %63 = arith.addf %47, %62 : vector<8x128xf32>
    %64 = arith.mulf %61, %63 : vector<8x128xf32>
    %65 = math.tanh %64 : vector<8x128xf32>
    %66 = arith.mulf %65, %61 : vector<8x128xf32>
    %c2_i32 = arith.constant 2 : i32
    %67 = arith.addi %7, %c2_i32 : i32
    %68 = arith.index_cast %67 : i32 to index
    %c0_28 = arith.constant 0 : index
    %c0_29 = arith.constant 0 : index
    %69 = vector.load %arg8[%68, %c0_28, %c0_29] : memref<8x8x128xf32, #tpu.memory_space<vmem>>, vector<1x8x128xf32>
    %70 = vector.shape_cast %69 : vector<1x8x128xf32> to vector<8x128xf32>
    %71 = vector.shape_cast %66 : vector<8x128xf32> to vector<1x8x128xf32>
    tpu.vector_store %arg8[%68, %c0_28, %c0_29], %71 {strides = array<i32>} : memref<8x8x128xf32, #tpu.memory_space<vmem>>, vector<1x8x128xf32>,
    %72 = vector.extract_strided_slice %14 {offsets = [24, 0], sizes = [8, 128], strides = [1, 1]} : vector<64x128xf32> to vector<8x128xf32>
    %c0_30 = arith.constant 0 : index
    %c0_31 = arith.constant 0 : index
    %73 = vector.load %arg4[%c0_30, %c0_31] : memref<128x128xf32, #tpu.memory_space<vmem>>, vector<128x128xf32>
    %cst_32 = arith.constant dense<0.000000e+00> : vector<8x128xf32>
    %74 = tpu.matmul %66, %73, %cst_32 {dimension_numbers = #tpu.dot_dimension_numbers<[1], [0], [0], [1], [0, 0, 1, 1], [], []>} : vector<8x128xf32>, vector<128x128xf32>, vector<8x128xf32> -> vector<8x128xf32>
    %75 = arith.addf %72, %74 : vector<8x128xf32>
    %76 = arith.negf %75 : vector<8x128xf32>
    %77 = math.exp %76 : vector<8x128xf32>
    %cst_33 = arith.constant 1.000000e+00 : f32
    %78 = vector.broadcast %cst_33 : f32 to vector<8x128xf32>
    %79 = arith.addf %78, %77 : vector<8x128xf32>
    %80 = arith.divf %78, %79 : vector<8x128xf32>
    %81 = math.tanh %75 : vector<8x128xf32>
    %82 = arith.addf %66, %81 : vector<8x128xf32>
    %83 = arith.mulf %80, %82 : vector<8x128xf32>
    %84 = math.tanh %83 : vector<8x128xf32>
    %85 = arith.mulf %84, %80 : vector<8x128xf32>
    %c3_i32 = arith.constant 3 : i32
    %86 = arith.addi %7, %c3_i32 : i32
    %87 = arith.index_cast %86 : i32 to index
    %c0_34 = arith.constant 0 : index
    %c0_35 = arith.constant 0 : index
    %88 = vector.load %arg8[%87, %c0_34, %c0_35] : memref<8x8x128xf32, #tpu.memory_space<vmem>>, vector<1x8x128xf32>
    %89 = vector.shape_cast %88 : vector<1x8x128xf32> to vector<8x128xf32>
    %90 = vector.shape_cast %85 : vector<8x128xf32> to vector<1x8x128xf32>
    tpu.vector_store %arg8[%87, %c0_34, %c0_35], %90 {strides = array<i32>} : memref<8x8x128xf32, #tpu.memory_space<vmem>>, vector<1x8x128xf32>,
    %91 = vector.extract_strided_slice %14 {offsets = [32, 0], sizes = [8, 128], strides = [1, 1]} : vector<64x128xf32> to vector<8x128xf32>
    %c0_36 = arith.constant 0 : index
    %c0_37 = arith.constant 0 : index
    %92 = vector.load %arg4[%c0_36, %c0_37] : memref<128x128xf32, #tpu.memory_space<vmem>>, vector<128x128xf32>
    %cst_38 = arith.constant dense<0.000000e+00> : vector<8x128xf32>
    %93 = tpu.matmul %85, %92, %cst_38 {dimension_numbers = #tpu.dot_dimension_numbers<[1], [0], [0], [1], [0, 0, 1, 1], [], []>} : vector<8x128xf32>, vector<128x128xf32>, vector<8x128xf32> -> vector<8x128xf32>
    %94 = arith.addf %91, %93 : vector<8x128xf32>
    %95 = arith.negf %94 : vector<8x128xf32>
    %96 = math.exp %95 : vector<8x128xf32>
    %cst_39 = arith.constant 1.000000e+00 : f32
    %97 = vector.broadcast %cst_39 : f32 to vector<8x128xf32>
    %98 = arith.addf %97, %96 : vector<8x128xf32>
    %99 = arith.divf %97, %98 : vector<8x128xf32>
    %100 = math.tanh %94 : vector<8x128xf32>
    %101 = arith.addf %85, %100 : vector<8x128xf32>
    %102 = arith.mulf %99, %101 : vector<8x128xf32>
    %103 = math.tanh %102 : vector<8x128xf32>
    %104 = arith.mulf %103, %99 : vector<8x128xf32>
    %c4_i32 = arith.constant 4 : i32
    %105 = arith.addi %7, %c4_i32 : i32
    %106 = arith.index_cast %105 : i32 to index
    %c0_40 = arith.constant 0 : index
    %c0_41 = arith.constant 0 : index
    %107 = vector.load %arg8[%106, %c0_40, %c0_41] : memref<8x8x128xf32, #tpu.memory_space<vmem>>, vector<1x8x128xf32>
    %108 = vector.shape_cast %107 : vector<1x8x128xf32> to vector<8x128xf32>
    %109 = vector.shape_cast %104 : vector<8x128xf32> to vector<1x8x128xf32>
    tpu.vector_store %arg8[%106, %c0_40, %c0_41], %109 {strides = array<i32>} : memref<8x8x128xf32, #tpu.memory_space<vmem>>, vector<1x8x128xf32>,
    %110 = vector.extract_strided_slice %14 {offsets = [40, 0], sizes = [8, 128], strides = [1, 1]} : vector<64x128xf32> to vector<8x128xf32>
    %c0_42 = arith.constant 0 : index
    %c0_43 = arith.constant 0 : index
    %111 = vector.load %arg4[%c0_42, %c0_43] : memref<128x128xf32, #tpu.memory_space<vmem>>, vector<128x128xf32>
    %cst_44 = arith.constant dense<0.000000e+00> : vector<8x128xf32>
    %112 = tpu.matmul %104, %111, %cst_44 {dimension_numbers = #tpu.dot_dimension_numbers<[1], [0], [0], [1], [0, 0, 1, 1], [], []>} : vector<8x128xf32>, vector<128x128xf32>, vector<8x128xf32> -> vector<8x128xf32>
    %113 = arith.addf %110, %112 : vector<8x128xf32>
    %114 = arith.negf %113 : vector<8x128xf32>
    %115 = math.exp %114 : vector<8x128xf32>
    %cst_45 = arith.constant 1.000000e+00 : f32
    %116 = vector.broadcast %cst_45 : f32 to vector<8x128xf32>
    %117 = arith.addf %116, %115 : vector<8x128xf32>
    %118 = arith.divf %116, %117 : vector<8x128xf32>
    %119 = math.tanh %113 : vector<8x128xf32>
    %120 = arith.addf %104, %119 : vector<8x128xf32>
    %121 = arith.mulf %118, %120 : vector<8x128xf32>
    %122 = math.tanh %121 : vector<8x128xf32>
    %123 = arith.mulf %122, %118 : vector<8x128xf32>
    %c5_i32 = arith.constant 5 : i32
    %124 = arith.addi %7, %c5_i32 : i32
    %125 = arith.index_cast %124 : i32 to index
    %c0_46 = arith.constant 0 : index
    %c0_47 = arith.constant 0 : index
    %126 = vector.load %arg8[%125, %c0_46, %c0_47] : memref<8x8x128xf32, #tpu.memory_space<vmem>>, vector<1x8x128xf32>
    %127 = vector.shape_cast %126 : vector<1x8x128xf32> to vector<8x128xf32>
    %128 = vector.shape_cast %123 : vector<8x128xf32> to vector<1x8x128xf32>
    tpu.vector_store %arg8[%125, %c0_46, %c0_47], %128 {strides = array<i32>} : memref<8x8x128xf32, #tpu.memory_space<vmem>>, vector<1x8x128xf32>,
    %129 = vector.extract_strided_slice %14 {offsets = [48, 0], sizes = [8, 128], strides = [1, 1]} : vector<64x128xf32> to vector<8x128xf32>
    %c0_48 = arith.constant 0 : index
    %c0_49 = arith.constant 0 : index
    %130 = vector.load %arg4[%c0_48, %c0_49] : memref<128x128xf32, #tpu.memory_space<vmem>>, vector<128x128xf32>
    %cst_50 = arith.constant dense<0.000000e+00> : vector<8x128xf32>
    %131 = tpu.matmul %123, %130, %cst_50 {dimension_numbers = #tpu.dot_dimension_numbers<[1], [0], [0], [1], [0, 0, 1, 1], [], []>} : vector<8x128xf32>, vector<128x128xf32>, vector<8x128xf32> -> vector<8x128xf32>
    %132 = arith.addf %129, %131 : vector<8x128xf32>
    %133 = arith.negf %132 : vector<8x128xf32>
    %134 = math.exp %133 : vector<8x128xf32>
    %cst_51 = arith.constant 1.000000e+00 : f32
    %135 = vector.broadcast %cst_51 : f32 to vector<8x128xf32>
    %136 = arith.addf %135, %134 : vector<8x128xf32>
    %137 = arith.divf %135, %136 : vector<8x128xf32>
    %138 = math.tanh %132 : vector<8x128xf32>
    %139 = arith.addf %123, %138 : vector<8x128xf32>
    %140 = arith.mulf %137, %139 : vector<8x128xf32>
    %141 = math.tanh %140 : vector<8x128xf32>
    %142 = arith.mulf %141, %137 : vector<8x128xf32>
    %c6_i32 = arith.constant 6 : i32
    %143 = arith.addi %7, %c6_i32 : i32
    %144 = arith.index_cast %143 : i32 to index
    %c0_52 = arith.constant 0 : index
    %c0_53 = arith.constant 0 : index
    %145 = vector.load %arg8[%144, %c0_52, %c0_53] : memref<8x8x128xf32, #tpu.memory_space<vmem>>, vector<1x8x128xf32>
    %146 = vector.shape_cast %145 : vector<1x8x128xf32> to vector<8x128xf32>
    %147 = vector.shape_cast %142 : vector<8x128xf32> to vector<1x8x128xf32>
    tpu.vector_store %arg8[%144, %c0_52, %c0_53], %147 {strides = array<i32>} : memref<8x8x128xf32, #tpu.memory_space<vmem>>, vector<1x8x128xf32>,
    %148 = vector.extract_strided_slice %14 {offsets = [56, 0], sizes = [8, 128], strides = [1, 1]} : vector<64x128xf32> to vector<8x128xf32>
    %c0_54 = arith.constant 0 : index
    %c0_55 = arith.constant 0 : index
    %149 = vector.load %arg4[%c0_54, %c0_55] : memref<128x128xf32, #tpu.memory_space<vmem>>, vector<128x128xf32>
    %cst_56 = arith.constant dense<0.000000e+00> : vector<8x128xf32>
    %150 = tpu.matmul %142, %149, %cst_56 {dimension_numbers = #tpu.dot_dimension_numbers<[1], [0], [0], [1], [0, 0, 1, 1], [], []>} : vector<8x128xf32>, vector<128x128xf32>, vector<8x128xf32> -> vector<8x128xf32>
    %151 = arith.addf %148, %150 : vector<8x128xf32>
    %152 = arith.negf %151 : vector<8x128xf32>
    %153 = math.exp %152 : vector<8x128xf32>
    %cst_57 = arith.constant 1.000000e+00 : f32
    %154 = vector.broadcast %cst_57 : f32 to vector<8x128xf32>
    %155 = arith.addf %154, %153 : vector<8x128xf32>
    %156 = arith.divf %154, %155 : vector<8x128xf32>
    %157 = math.tanh %151 : vector<8x128xf32>
    %158 = arith.addf %142, %157 : vector<8x128xf32>
    %159 = arith.mulf %156, %158 : vector<8x128xf32>
    %160 = math.tanh %159 : vector<8x128xf32>
    %161 = arith.mulf %160, %156 : vector<8x128xf32>
    %c7_i32 = arith.constant 7 : i32
    %162 = arith.addi %7, %c7_i32 : i32
    %163 = arith.index_cast %162 : i32 to index
    %c0_58 = arith.constant 0 : index
    %c0_59 = arith.constant 0 : index
    %164 = vector.load %arg8[%163, %c0_58, %c0_59] : memref<8x8x128xf32, #tpu.memory_space<vmem>>, vector<1x8x128xf32>
    %165 = vector.shape_cast %164 : vector<1x8x128xf32> to vector<8x128xf32>
    %166 = vector.shape_cast %161 : vector<8x128xf32> to vector<1x8x128xf32>
    tpu.vector_store %arg8[%163, %c0_58, %c0_59], %166 {strides = array<i32>} : memref<8x8x128xf32, #tpu.memory_space<vmem>>, vector<1x8x128xf32>,
    %c1_i32_60 = arith.constant 1 : i32
    %c0_61 = arith.constant 0 : index
    %c0_62 = arith.constant 0 : index
    %167 = vector.load %arg9[%c0_61, %c0_62] : memref<8x128xf32, #tpu.memory_space<vmem>>, vector<8x128xf32>
    tpu.vector_store %arg9[%c0_61, %c0_62], %161 {strides = array<i32>} : memref<8x128xf32, #tpu.memory_space<vmem>>, vector<8x128xf32>,
    %c0_63 = arith.constant 0 : index
    %c0_64 = arith.constant 0 : index
    %168 = vector.load %arg10[%c0_63, %c0_64] : memref<8x128xf32, #tpu.memory_space<vmem>>, vector<8x128xf32>
    tpu.vector_store %arg10[%c0_63, %c0_64], %159 {strides = array<i32>} : memref<8x128xf32, #tpu.memory_space<vmem>>, vector<8x128xf32>,
    return
  }
  func.func @transform_0(%arg0: i32, %arg1: i32) -> (i32, i32, i32) {
    %c0_i32 = arith.constant 0 : i32
    %c0_i32_0 = arith.constant 0 : i32
    return %arg1, %arg0, %c0_i32 : i32, i32, i32
  }
  func.func @transform_1(%arg0: i32, %arg1: i32) -> (i32, i32) {
    %c0_i32 = arith.constant 0 : i32
    %c0_i32_0 = arith.constant 0 : i32
    %c0_i32_1 = arith.constant 0 : i32
    return %c0_i32, %c0_i32_0 : i32, i32
  }
  func.func @transform_2(%arg0: i32, %arg1: i32) -> (i32, i32) {
    %c0_i32 = arith.constant 0 : i32
    %c0_i32_0 = arith.constant 0 : i32
    %c0_i32_1 = arith.constant 0 : i32
    return %c0_i32, %c0_i32_0 : i32, i32
  }
  func.func @transform_3(%arg0: i32, %arg1: i32) -> (i32, i32) {
    %c0_i32 = arith.constant 0 : i32
    %c0_i32_0 = arith.constant 0 : i32
    %c0_i32_1 = arith.constant 0 : i32
    return %c0_i32, %c0_i32_0 : i32, i32
  }
  func.func @transform_4(%arg0: i32, %arg1: i32) -> (i32, i32) {
    %c0_i32 = arith.constant 0 : i32
    %c0_i32_0 = arith.constant 0 : i32
    return %arg0, %c0_i32 : i32, i32
  }
  func.func @transform_5(%arg0: i32, %arg1: i32) -> (i32, i32) {
    %c0_i32 = arith.constant 0 : i32
    %c0_i32_0 = arith.constant 0 : i32
    return %arg0, %c0_i32 : i32, i32
  }
  func.func @transform_6(%arg0: i32, %arg1: i32) -> (i32, i32, i32) {
    %c0_i32 = arith.constant 0 : i32
    %c0_i32_0 = arith.constant 0 : i32
    return %arg1, %arg0, %c0_i32 : i32, i32, i32
  }
  func.func @transform_7(%arg0: i32, %arg1: i32) -> (i32, i32) {
    %c0_i32 = arith.constant 0 : i32
    %c0_i32_0 = arith.constant 0 : i32
    return %arg0, %c0_i32 : i32, i32
  }
  func.func @transform_8(%arg0: i32, %arg1: i32) -> (i32, i32) {
    %c0_i32 = arith.constant 0 : i32
    %c0_i32_0 = arith.constant 0 : i32
    return %arg0, %c0_i32 : i32, i32
  }
}

</mosaic_0001>

<bundles_post_ra>
// kernel: lstm_forward.1
= control target key start
LH: loop header
LB: loop body
LE: loop exit
PB: predicated region body
PF: predicated region fallthrough
CT: control target
= control target key end

     0   :  { %v1799_v2 = vmov 0.0|0.0   ;;  %vm1800_vm0 = vmmov 0   ;;  %v1801_v4 = vmov 0.0   ;;  %s2192_s1 = inlined_call_operand.vmem [shape: f32[128,128], index: 1, kind: input, shape index: {}]   ;;  %s2193_s2 = inlined_call_operand.vmem [shape: f32[128,128], index: 2, kind: input, shape index: {}]   ;;  %s2194_s5 = inlined_call_operand.vmem [shape: f32[8,128], index: 5, kind: input, shape index: {}]   ;;  %s2195_s0 = inlined_call_operand.vmem [shape: f32[8,8,128], index: 0, kind: input, shape index: {}]   ;;  %s2196_s4 = inlined_call_operand.vmem [shape: f32[8,128], index: 4, kind: input, shape index: {}]   ;;  %s2197_s3 = inlined_call_operand.vmem [shape: f32[1,128], index: 3, kind: input, shape index: {}]   ;;  %s2198_s6 = inlined_call_operand.vmem [shape: f32[8,8,128], index: 6, kind: output, shape index: {0}]   ;;  %s2199_s8 = inlined_call_operand.vmem [shape: f32[8,128], index: 8, kind: output, shape index: {2}]   ;;  %s2200_s7 = inlined_call_operand.vmem [shape: f32[8,128], index: 7, kind: output, shape index: {1}]  }
   0x1   :  { %v46_v0 = vld [vmem:[%s2192_s1] sm:$0xff]  ;;  %v47_v1 = vld [vmem:[%s2192_s1 + $0x8] sm:$0xff]  ;;  %1540 = vmatprep.subr.bf16.mxu1 %v1799_v2  ;;  %1260 = vmatprep.mubr.msk.f32.mxu1 %vm1800_vm0, %v1801_v4  ;;  %v48_v7 = vld [vmem:[%s2192_s1 + $0x10] sm:$0xff] }
   0x2   :  { %v173_v3 = vld [vmem:[%s2193_s2] sm:$0xff]  ;;  %v1508_v5 = vpack.c.bf16 %v47_v1, %v46_v0  ;;  %v174_v6 = vld [vmem:[%s2193_s2 + $0x8] sm:$0xff]  ;;  %v49_v8 = vld [vmem:[%s2192_s1 + $0x18] sm:$0xff] }
   0x3   :  { %v1868_v9 = vpack.c.bf16 %v174_v6, %v173_v3  ;;  %v1512_v10 = vpack.c.bf16 %v49_v8, %v48_v7  ;;  %v175_v11 = vld [vmem:[%s2193_s2 + $0x10] sm:$0xff]  ;;  %v176_v12 = vld [vmem:[%s2193_s2 + $0x18] sm:$0xff]  ;;  %v50_v13 = vld [vmem:[%s2192_s1 + $0x20] sm:$0xff] }
   0x4   :  { %1509 = vmatprep.subr.bf16.mxu0 %v1508_v5  ;;  %v51_v14 = vld [vmem:[%s2192_s1 + $0x28] sm:$0xff]  ;;  %v1883_v15 = vpack.c.bf16 %v176_v12, %v175_v11  ;;  %v177_v17 = vld [vmem:[%s2193_s2 + $0x20] sm:$0xff]  ;;  %v52_v19 = vld [vmem:[%s2192_s1 + $0x30] sm:$0xff] }
   0x5   :  { %1511 = vmatpush3.bf16.msra.mxu0 %v1508_v5  ;;  %1542 = vmatpush3.bf16.msra.mxu1 %v1868_v9  ;;  %v1516_v16 = vpack.c.bf16 %v51_v14, %v50_v13  ;;  %v178_v18 = vld [vmem:[%s2193_s2 + $0x28] sm:$0xff]  ;;  %v53_v20 = vld [vmem:[%s2192_s1 + $0x38] sm:$0xff]  ;;  %v179_v23 = vld [vmem:[%s2193_s2 + $0x30] sm:$0xff] }
   0x6   :  { %1513 = vmatprep.subr.bf16.mxu0 %v1512_v10  ;;  %1543 = vmatprep.subr.bf16.mxu1 %v1799_v2  ;;  %v1899_v21 = vpack.c.bf16 %v178_v18, %v177_v17  ;;  %v1520_v22 = vpack.c.bf16 %v53_v20, %v52_v19  ;;  %v180_v24 = vld [vmem:[%s2193_s2 + $0x38] sm:$0xff]  ;;  %v54_v25 = vld [vmem:[%s2192_s1 + $0x40] sm:$0xff]  ;;  %v55_v26 = vld [vmem:[%s2192_s1 + $0x48] sm:$0xff] }
   0x7   :  { %v38_v27 = vld [vmem:[%s2195_s0] sm:$0xff]  ;;  %v1918_v28 = vpack.c.bf16 %v180_v24, %v179_v23  ;;  %v1524_v29 = vpack.c.bf16 %v55_v26, %v54_v25  ;;  %v182_v31 = vld [vmem:[%s2193_s2 + $0x48] sm:$0xff]  ;;  %v56_v32 = vld [vmem:[%s2192_s1 + $0x50] sm:$0xff] }
   0x8   :  { %1216 = vmatprep.mubr.f32.mxu0 %v38_v27  ;;  %v181_v30 = vld [vmem:[%s2193_s2 + $0x40] sm:$0xff]  ;;  %v57_v33 = vld [vmem:[%s2192_s1 + $0x58] sm:$0xff]  ;;  %v183_v36 = vld [vmem:[%s2193_s2 + $0x50] sm:$0xff] }
   0x9   :  { %1515 = vmatpush3.bf16.msra.mxu0 %v1512_v10  ;;  %1545 = vmatpush3.bf16.msra.mxu1 %v1883_v15  ;;  %v1934_v34 = vpack.c.bf16 %v182_v31, %v181_v30  ;;  %v1528_v35 = vpack.c.bf16 %v57_v33, %v56_v32  ;;  %v184_v37 = vld [vmem:[%s2193_s2 + $0x58] sm:$0xff]  ;;  %v58_v38 = vld [vmem:[%s2192_s1 + $0x60] sm:$0xff]  ;;  %v59_v39 = vld [vmem:[%s2192_s1 + $0x68] sm:$0xff] }
   0xa   :  { %1517 = vmatprep.subr.bf16.mxu0 %v1516_v16  ;;  %1546 = vmatprep.subr.bf16.mxu1 %v1799_v2  ;;  %v1950_v40 = vpack.c.bf16 %v184_v37, %v183_v36  ;;  %v1532_v41 = vpack.c.bf16 %v59_v39, %v58_v38  ;;  %v185_v42 = vld [vmem:[%s2193_s2 + $0x60] sm:$0xff]  ;;  %v186_v43 = vld [vmem:[%s2193_s2 + $0x68] sm:$0xff]  ;;  %v60_v44 = vld [vmem:[%s2192_s1 + $0x70] sm:$0xff] }
   0xb   :  { %v61_v45 = vld [vmem:[%s2192_s1 + $0x78] sm:$0xff]  ;;  %v1966_v46 = vpack.c.bf16 %v186_v43, %v185_v42  ;;  %v187_v48 = vld [vmem:[%s2193_s2 + $0x70] sm:$0xff]  ;;  %v39_v51 = vld [vmem:[%s2195_s0 + $0x8] sm:$0xff] }
   0xc   :  { %v1536_v47 = vpack.c.bf16 %v61_v45, %v60_v44  ;;  %v188_v49 = vld [vmem:[%s2193_s2 + $0x78] sm:$0xff]  ;;  %v1986_v52 = vld [vmem:[%s2196_s4] sm:$0xff]  ;;  %v40_v53 = vld [vmem:[%s2195_s0 + $0x10] sm:$0xff] }
   0xd   :  { %1519 = vmatpush3.bf16.msra.mxu0 %v1516_v16  ;;  %1548 = vmatpush3.bf16.msra.mxu1 %v1899_v21  ;;  %v1976_v50 = vpack.c.bf16 %v188_v49, %v187_v48  ;;  %v41_v54 = vld [vmem:[%s2195_s0 + $0x18] sm:$0xff]  ;;  %v42_v55 = vld [vmem:[%s2195_s0 + $0x20] sm:$0xff]  ;;  %v43_v56 = vld [vmem:[%s2195_s0 + $0x28] sm:$0xff] }
   0xe   :  { %1521 = vmatprep.subr.bf16.mxu0 %v1520_v22  ;;  %1549 = vmatprep.subr.bf16.mxu1 %v1799_v2  ;;  %v44_v57 = vld [vmem:[%s2195_s0 + $0x30] sm:$0xff]  ;;  %v45_v58 = vld [vmem:[%s2195_s0 + $0x38] sm:$0xff]  ;;  %v2048_v59 = vld [vmem:[%s2197_s3] ss:$0 sm:$0xff] }
  0x11   :  { %1523 = vmatpush3.bf16.msra.mxu0 %v1520_v22  ;;  %1551 = vmatpush3.bf16.msra.mxu1 %v1918_v28 }
  0x12   :  { %1525 = vmatprep.subr.bf16.mxu0 %v1524_v29  ;;  %1552 = vmatprep.subr.bf16.mxu1 %v1799_v2 }
  0x15   :  { %1527 = vmatpush3.bf16.msra.mxu0 %v1524_v29  ;;  %1554 = vmatpush3.bf16.msra.mxu1 %v1934_v34 }
  0x16   :  { %1529 = vmatprep.subr.bf16.mxu0 %v1528_v35  ;;  %1555 = vmatprep.subr.bf16.mxu1 %v1799_v2 }
  0x19   :  { %1531 = vmatpush3.bf16.msra.mxu0 %v1528_v35  ;;  %1557 = vmatpush3.bf16.msra.mxu1 %v1950_v40 }
  0x1a   :  { %1533 = vmatprep.subr.bf16.mxu0 %v1532_v41  ;;  %1558 = vmatprep.subr.bf16.mxu1 %v1799_v2 }
  0x1d   :  { %1535 = vmatpush3.bf16.msra.mxu0 %v1532_v41  ;;  %1560 = vmatpush3.bf16.msra.mxu1 %v1966_v46 }
  0x1e   :  { %1537 = vmatprep.subr.bf16.mxu0 %v1536_v47  ;;  %1561 = vmatprep.subr.bf16.mxu1 %v1799_v2 }
  0x21   :  { %1539 = vmatpush3.bf16.msra.mxu0 %v1536_v47  ;;  %1563 = vmatpush3.bf16.msra.mxu1 %v1976_v50 }
  0x22   :  { %1564 = vmatprep.subr.bf16.mxu0 %v1799_v2  ;;  %1588 = vmatprep.subr.bf16.mxu1 %v1799_v2 }
  0x24   :  { %1217 = vmatmul.mubr.f32.vlgmr.msra.gmra.mrb[0].mxu0 %v39_v51  ;;  %1261 = vmatmul.mubr.f32.vlgmr.msra.gmra.mrb[0].mxu1 %v1986_v52 }
  0x25   :  { %1566 = vmatpush3.bf16.msra.mxu0 %v1868_v9  ;;  %1590 = vmatpush3.bf16.msra.mxu1 %v1868_v9 }
  0x26   :  { %1567 = vmatprep.subr.bf16.mxu0 %v1799_v2  ;;  %1591 = vmatprep.subr.bf16.mxu1 %v1799_v2 }
  0x27   :  { %1330 = vmatprep.mubr.msk.f32.mxu1 %vm1800_vm0, %v1801_v4  ;;  %1219 = vmatprep.mubr.f32.mxu0 %v40_v53 }
  0x28   :  { %1220 = vmatmul.mubr.f32.gmra.mrb[2].mxu0 %v41_v54 }
  0x29   :  { %1569 = vmatpush3.bf16.msra.mxu0 %v1883_v15  ;;  %1593 = vmatpush3.bf16.msra.mxu1 %v1883_v15 }
  0x2a   :  { %1570 = vmatprep.subr.bf16.mxu0 %v1799_v2  ;;  %1594 = vmatprep.subr.bf16.mxu1 %v1799_v2 }
  0x2b   :  { %1222 = vmatprep.mubr.f32.mxu0 %v42_v55 }
  0x2c   :  { %1223 = vmatmul.mubr.f32.gmra.mrb[4].mxu0 %v43_v56 }
  0x2d   :  { %1572 = vmatpush3.bf16.msra.mxu0 %v1899_v21  ;;  %1596 = vmatpush3.bf16.msra.mxu1 %v1899_v21 }
  0x2e   :  { %1573 = vmatprep.subr.bf16.mxu0 %v1799_v2  ;;  %1597 = vmatprep.subr.bf16.mxu1 %v1799_v2 }
  0x2f   :  { %1225 = vmatprep.mubr.f32.mxu0 %v44_v57 }
  0x30   :  { %1226 = vmatmul.mubr.f32.gmra.mrb[6].mxu0 %v45_v58 }
  0x31   :  { %1575 = vmatpush3.bf16.msra.mxu0 %v1918_v28  ;;  %1599 = vmatpush3.bf16.msra.mxu1 %v1918_v28 }
  0x32   :  { %1576 = vmatprep.subr.bf16.mxu0 %v1799_v2  ;;  %1600 = vmatprep.subr.bf16.mxu1 %v1799_v2 }
  0x33   :  { %1295 = vmatprep.mubr.msk.f32.mxu0 %vm1800_vm0, %v1801_v4 }
  0x35   :  { %1578 = vmatpush3.bf16.msra.mxu0 %v1934_v34  ;;  %1602 = vmatpush3.bf16.msra.mxu1 %v1934_v34 }
  0x36   :  { %1579 = vmatprep.subr.bf16.mxu0 %v1799_v2  ;;  %1603 = vmatprep.subr.bf16.mxu1 %v1799_v2 }
  0x39   :  { %1581 = vmatpush3.bf16.msra.mxu0 %v1950_v40  ;;  %1605 = vmatpush3.bf16.msra.mxu1 %v1950_v40 }
  0x3a   :  { %1582 = vmatprep.subr.bf16.mxu0 %v1799_v2  ;;  %1606 = vmatprep.subr.bf16.mxu1 %v1799_v2 }
  0x3d   :  { %1584 = vmatpush3.bf16.msra.mxu0 %v1966_v46  ;;  %1608 = vmatpush3.bf16.msra.mxu1 %v1966_v46 }
  0x3e   :  { %1585 = vmatprep.subr.bf16.mxu0 %v1799_v2  ;;  %1609 = vmatprep.subr.bf16.mxu1 %v1799_v2 }
  0x41   :  { %1587 = vmatpush3.bf16.msra.mxu0 %v1976_v50  ;;  %1611 = vmatpush3.bf16.msra.mxu1 %v1976_v50 }
  0x42   :  { %1612 = vmatprep.subr.bf16.mxu0 %v1799_v2  ;;  %1636 = vmatprep.subr.bf16.mxu1 %v1799_v2 }
  0xf7   :  { %v1218_v60 = vpop.f32.mrb[0].mxu0  ;;  %v255_v61 = vpop.f32.mrb[0].mxu1 }
  0xf8   :  { %v134_v62 = vpop.f32.mrb[1].mxu0  ;;  %v1262_v63 = vpop.f32.mrb[1].mxu1  ;;  %v140_v22 = vadd.f32 %v1218_v60, %v2048_v59 }
  0xf9   :  { %v135_v0 = vadd.f32 %v2048_v59, %v134_v62 }
  0xfb   :  { %v259_v1 = vadd.f32 %v255_v61, %v135_v0  ;;  %v2073_v14 = vpop.f32.mrb[2].mxu0 }
  0xfc   :  { %v144_v16 = vpop.f32.mrb[3].mxu0  ;;  %v150_v53 = vadd.f32 %v2073_v14, %v2048_v59 }
  0xfd   :  { %v1009_v3 = vmul.f32 -1.442695, %v259_v1  ;;  %v145_v37 = vadd.f32 %v2048_v59, %v144_v16 }
  0xff   :  { %1735 = vpow2.f32 %v1009_v3  ;;  %v2075_v17 = vpop.f32.mrb[4].mxu0 }
 0x100   :  { %1737 = vtanh.f32 %v259_v1  ;;  %v2077_v18 = vpop.f32.mrb[5].mxu0 }
 0x103   :  { %v2079_v19 = vpop.f32.mrb[6].mxu0 }
 0x104   :  { %v2081_v20 = vpop.f32.mrb[7].mxu0 }
 0x109   :  { %v1736_v5 = vpop.eup %1735 }
 0x10a   :  { %v263_v6 = vadd.f32 1.0, %v1736_v5  ;;  %v1738_v7 = vpop.eup %1737  ;;  %v155_v5 = vadd.f32 %v2048_v59, %v2077_v18 }
 0x10b   :  { %v267_v8 = vadd.f32 %v1738_v7, %v1986_v52 }
 0x10c   :  { %1739 = vrcp.f32 %v263_v6 }
 0x116   :  { %v1740_v10 = vpop.eup %1739 }
 0x117   :  { %v268_v11 = vmul.f32 %v1740_v10, %v267_v8 }
 0x119   :  { %1741 = vtanh.f32 %v268_v11 }
 0x123   :  { %v1742_v12 = vpop.eup %1741 }
 0x124   :  { %v270_v13 = vmul.f32 %v1742_v12, %v1740_v10 }
 0x126   :  { %272 = vst [vmem:[%s2198_s6] sm:$0xff] %v270_v13  ;;  %1296 = vmatmul.mubr.f32.vlgmr.msra.gmra.mrb[8].mxu0 %v270_v13 }
 0x127   :  { %1614 = vmatpush3.bf16.msra.mxu0 %v1868_v9  ;;  %1365 = vmatprep.mubr.msk.f32.mxu0 %vm1800_vm0, %v1801_v4 }
 0x128   :  { %1615 = vmatprep.subr.bf16.mxu0 %v1799_v2 }
 0x12b   :  { %1617 = vmatpush3.bf16.msra.mxu0 %v1883_v15 }
 0x12c   :  { %1618 = vmatprep.subr.bf16.mxu0 %v1799_v2 }
 0x12f   :  { %1620 = vmatpush3.bf16.msra.mxu0 %v1899_v21 }
 0x130   :  { %1621 = vmatprep.subr.bf16.mxu0 %v1799_v2 }
 0x133   :  { %1623 = vmatpush3.bf16.msra.mxu0 %v1918_v28 }
 0x134   :  { %1624 = vmatprep.subr.bf16.mxu0 %v1799_v2 }
 0x137   :  { %1626 = vmatpush3.bf16.msra.mxu0 %v1934_v34 }
 0x138   :  { %1627 = vmatprep.subr.bf16.mxu0 %v1799_v2 }
 0x13b   :  { %1629 = vmatpush3.bf16.msra.mxu0 %v1950_v40 }
 0x13c   :  { %1630 = vmatprep.subr.bf16.mxu0 %v1799_v2 }
 0x13f   :  { %1632 = vmatpush3.bf16.msra.mxu0 %v1966_v46 }
 0x140   :  { %1633 = vmatprep.subr.bf16.mxu0 %v1799_v2 }
 0x143   :  { %1635 = vmatpush3.bf16.msra.mxu0 %v1976_v50 }
 0x144   :  { %1660 = vmatprep.subr.bf16.mxu0 %v1799_v2 }
 0x1f9   :  { %v355_v23 = vpop.f32.mrb[8].mxu0 }
 0x1fa   :  { %v359_v24 = vadd.f32 %v355_v23, %v140_v22  ;;  %v1297_v25 = vpop.f32.mrb[9].mxu0 }
 0x1fc   :  { %v1010_v26 = vmul.f32 -1.442695, %v359_v24 }
 0x1fe   :  { %1743 = vpow2.f32 %v1010_v26 }
 0x1ff   :  { %1745 = vtanh.f32 %v359_v24 }
 0x208   :  { %v1744_v27 = vpop.eup %1743 }
 0x209   :  { %v363_v29 = vadd.f32 1.0, %v1744_v27  ;;  %v1746_v30 = vpop.eup %1745 }
 0x20a   :  { %v367_v31 = vadd.f32 %v1746_v30, %v270_v13 }
 0x20b   :  { %1747 = vrcp.f32 %v363_v29 }
 0x215   :  { %v1748_v32 = vpop.eup %1747 }
 0x216   :  { %v368_v33 = vmul.f32 %v1748_v32, %v367_v31 }
 0x218   :  { %1749 = vtanh.f32 %v368_v33 }
 0x222   :  { %v1750_v35 = vpop.eup %1749 }
 0x223   :  { %v370_v36 = vmul.f32 %v1750_v35, %v1748_v32 }
 0x225   :  { %1011 = vst [vmem:[%s2198_s6 + $0x8] sm:$0xff] %v370_v36  ;;  %1331 = vmatmul.mubr.f32.vlgmr.msra.gmra.mrb[2].mxu1 %v370_v36 }
 0x226   :  { %1638 = vmatpush3.bf16.msra.mxu1 %v1868_v9  ;;  %1400 = vmatprep.mubr.msk.f32.mxu1 %vm1800_vm0, %v1801_v4 }
 0x227   :  { %1639 = vmatprep.subr.bf16.mxu1 %v1799_v2 }
 0x22a   :  { %1641 = vmatpush3.bf16.msra.mxu1 %v1883_v15 }
 0x22b   :  { %1642 = vmatprep.subr.bf16.mxu1 %v1799_v2 }
 0x22e   :  { %1644 = vmatpush3.bf16.msra.mxu1 %v1899_v21 }
 0x22f   :  { %1645 = vmatprep.subr.bf16.mxu1 %v1799_v2 }
 0x232   :  { %1647 = vmatpush3.bf16.msra.mxu1 %v1918_v28 }
 0x233   :  { %1648 = vmatprep.subr.bf16.mxu1 %v1799_v2 }
 0x236   :  { %1650 = vmatpush3.bf16.msra.mxu1 %v1934_v34 }
 0x237   :  { %1651 = vmatprep.subr.bf16.mxu1 %v1799_v2 }
 0x23a   :  { %1653 = vmatpush3.bf16.msra.mxu1 %v1950_v40 }
 0x23b   :  { %1654 = vmatprep.subr.bf16.mxu1 %v1799_v2 }
 0x23e   :  { %1656 = vmatpush3.bf16.msra.mxu1 %v1966_v46 }
 0x23f   :  { %1657 = vmatprep.subr.bf16.mxu1 %v1799_v2 }
 0x242   :  { %1659 = vmatpush3.bf16.msra.mxu1 %v1976_v50 }
 0x243   :  { %1684 = vmatprep.subr.bf16.mxu1 %v1799_v2 }
 0x2f8   :  { %v457_v38 = vpop.f32.mrb[2].mxu1 }
 0x2f9   :  { %v461_v39 = vadd.f32 %v457_v38, %v145_v37  ;;  %v1332_v41 = vpop.f32.mrb[3].mxu1 }
 0x2fb   :  { %v1012_v42 = vmul.f32 -1.442695, %v461_v39 }
 0x2fd   :  { %1751 = vpow2.f32 %v1012_v42 }
 0x2fe   :  { %1753 = vtanh.f32 %v461_v39 }
 0x307   :  { %v1752_v43 = vpop.eup %1751 }
 0x308   :  { %v465_v44 = vadd.f32 1.0, %v1752_v43  ;;  %v1754_v45 = vpop.eup %1753 }
 0x309   :  { %v469_v47 = vadd.f32 %v1754_v45, %v370_v36 }
 0x30a   :  { %1755 = vrcp.f32 %v465_v44 }
 0x314   :  { %v1756_v48 = vpop.eup %1755 }
 0x315   :  { %v470_v49 = vmul.f32 %v1756_v48, %v469_v47 }
 0x317   :  { %1757 = vtanh.f32 %v470_v49 }
 0x321   :  { %v1758_v51 = vpop.eup %1757 }
 0x322   :  { %v472_v52 = vmul.f32 %v1758_v51, %v1756_v48 }
 0x324   :  { %1013 = vst [vmem:[%s2198_s6 + $0x10] sm:$0xff] %v472_v52  ;;  %1366 = vmatmul.mubr.f32.vlgmr.msra.gmra.mrb[10].mxu0 %v472_v52 }
 0x325   :  { %1662 = vmatpush3.bf16.msra.mxu0 %v1868_v9  ;;  %1435 = vmatprep.mubr.msk.f32.mxu0 %vm1800_vm0, %v1801_v4 }
 0x326   :  { %1663 = vmatprep.subr.bf16.mxu0 %v1799_v2 }
 0x329   :  { %1665 = vmatpush3.bf16.msra.mxu0 %v1883_v15 }
 0x32a   :  { %1666 = vmatprep.subr.bf16.mxu0 %v1799_v2 }
 0x32d   :  { %1668 = vmatpush3.bf16.msra.mxu0 %v1899_v21 }
 0x32e   :  { %1669 = vmatprep.subr.bf16.mxu0 %v1799_v2 }
 0x331   :  { %1671 = vmatpush3.bf16.msra.mxu0 %v1918_v28 }
 0x332   :  { %1672 = vmatprep.subr.bf16.mxu0 %v1799_v2 }
 0x335   :  { %1674 = vmatpush3.bf16.msra.mxu0 %v1934_v34 }
 0x336   :  { %1675 = vmatprep.subr.bf16.mxu0 %v1799_v2 }
 0x339   :  { %1677 = vmatpush3.bf16.msra.mxu0 %v1950_v40 }
 0x33a   :  { %1678 = vmatprep.subr.bf16.mxu0 %v1799_v2 }
 0x33d   :  { %1680 = vmatpush3.bf16.msra.mxu0 %v1966_v46 }
 0x33e   :  { %1681 = vmatprep.subr.bf16.mxu0 %v1799_v2 }
 0x341   :  { %1683 = vmatpush3.bf16.msra.mxu0 %v1976_v50 }
 0x342   :  { %1708 = vmatprep.subr.bf16.mxu0 %v1799_v2 }
 0x3f7   :  { %v559_v54 = vpop.f32.mrb[10].mxu0 }
 0x3f8   :  { %v563_v55 = vadd.f32 %v559_v54, %v150_v53  ;;  %v1367_v56 = vpop.f32.mrb[11].mxu0 }
 0x3fa   :  { %v1014_v57 = vmul.f32 -1.442695, %v563_v55 }
 0x3fc   :  { %1759 = vpow2.f32 %v1014_v57 }
 0x3fd   :  { %1761 = vtanh.f32 %v563_v55 }
 0x406   :  { %v1760_v58 = vpop.eup %1759 }
 0x407   :  { %v567_v60 = vadd.f32 1.0, %v1760_v58  ;;  %v1762_v61 = vpop.eup %1761 }
 0x408   :  { %v571_v62 = vadd.f32 %v1762_v61, %v472_v52 }
 0x409   :  { %1763 = vrcp.f32 %v567_v60 }
 0x413   :  { %v1764_v63 = vpop.eup %1763 }
 0x414   :  { %v572_v0 = vmul.f32 %v1764_v63, %v571_v62 }
 0x416   :  { %1765 = vtanh.f32 %v572_v0 }
 0x420   :  { %v1766_v1 = vpop.eup %1765 }
 0x421   :  { %v574_v3 = vmul.f32 %v1766_v1, %v1764_v63 }
 0x423   :  { %1015 = vst [vmem:[%s2198_s6 + $0x18] sm:$0xff] %v574_v3  ;;  %1401 = vmatmul.mubr.f32.vlgmr.msra.gmra.mrb[4].mxu1 %v574_v3 }
 0x424   :  { %1686 = vmatpush3.bf16.msra.mxu1 %v1868_v9  ;;  %1470 = vmatprep.mubr.msk.f32.mxu1 %vm1800_vm0, %v1801_v4 }
 0x425   :  { %1687 = vmatprep.subr.bf16.mxu1 %v1799_v2 }
 0x428   :  { %1689 = vmatpush3.bf16.msra.mxu1 %v1883_v15 }
 0x429   :  { %1690 = vmatprep.subr.bf16.mxu1 %v1799_v2 }
 0x42c   :  { %1692 = vmatpush3.bf16.msra.mxu1 %v1899_v21 }
 0x42d   :  { %1693 = vmatprep.subr.bf16.mxu1 %v1799_v2 }
 0x430   :  { %1695 = vmatpush3.bf16.msra.mxu1 %v1918_v28 }
 0x431   :  { %1696 = vmatprep.subr.bf16.mxu1 %v1799_v2 }
 0x434   :  { %1698 = vmatpush3.bf16.msra.mxu1 %v1934_v34 }
 0x435   :  { %1699 = vmatprep.subr.bf16.mxu1 %v1799_v2 }
 0x438   :  { %1701 = vmatpush3.bf16.msra.mxu1 %v1950_v40 }
 0x439   :  { %1702 = vmatprep.subr.bf16.mxu1 %v1799_v2 }
 0x43c   :  { %1704 = vmatpush3.bf16.msra.mxu1 %v1966_v46 }
 0x43d   :  { %1705 = vmatprep.subr.bf16.mxu1 %v1799_v2 }
 0x440   :  { %1707 = vmatpush3.bf16.msra.mxu1 %v1976_v50 }
 0x4f6   :  { %v661_v6 = vpop.f32.mrb[4].mxu1 }
 0x4f7   :  { %v665_v7 = vadd.f32 %v661_v6, %v155_v5  ;;  %v1402_v8 = vpop.f32.mrb[5].mxu1 }
 0x4f9   :  { %v1016_v10 = vmul.f32 -1.442695, %v665_v7 }
 0x4fb   :  { %1767 = vpow2.f32 %v1016_v10 }
 0x4fc   :  { %1769 = vtanh.f32 %v665_v7 }
 0x505   :  { %v1768_v11 = vpop.eup %1767 }
 0x506   :  { %v669_v12 = vadd.f32 1.0, %v1768_v11  ;;  %v1770_v13 = vpop.eup %1769 }
 0x507   :  { %v673_v14 = vadd.f32 %v1770_v13, %v574_v3 }
 0x508   :  { %1771 = vrcp.f32 %v669_v12 }
 0x512   :  { %v1772_v16 = vpop.eup %1771 }
 0x513   :  { %v674_v22 = vmul.f32 %v1772_v16, %v673_v14 }
 0x515   :  { %1773 = vtanh.f32 %v674_v22 }
 0x51f   :  { %v1774_v23 = vpop.eup %1773 }
 0x520   :  { %v676_v24 = vmul.f32 %v1774_v23, %v1772_v16 }
 0x522   :  { %1017 = vst [vmem:[%s2198_s6 + $0x20] sm:$0xff] %v676_v24  ;;  %1436 = vmatmul.mubr.f32.vlgmr.msra.gmra.mrb[12].mxu0 %v676_v24 }
 0x523   :  { %1710 = vmatpush3.bf16.msra.mxu0 %v1868_v9  ;;  %1505 = vmatprep.mubr.msk.f32.mxu0 %vm1800_vm0, %v1801_v4  ;;  %v160_v4 = vadd.f32 %v2075_v17, %v2048_v59 }
 0x524   :  { %1711 = vmatprep.subr.bf16.mxu0 %v1799_v2 }
 0x527   :  { %1713 = vmatpush3.bf16.msra.mxu0 %v1883_v15 }
 0x528   :  { %1714 = vmatprep.subr.bf16.mxu0 %v1799_v2 }
 0x52b   :  { %1716 = vmatpush3.bf16.msra.mxu0 %v1899_v21 }
 0x52c   :  { %1717 = vmatprep.subr.bf16.mxu0 %v1799_v2 }
 0x52f   :  { %1719 = vmatpush3.bf16.msra.mxu0 %v1918_v28 }
 0x530   :  { %1720 = vmatprep.subr.bf16.mxu0 %v1799_v2 }
 0x533   :  { %1722 = vmatpush3.bf16.msra.mxu0 %v1934_v34 }
 0x534   :  { %1723 = vmatprep.subr.bf16.mxu0 %v1799_v2 }
 0x537   :  { %1725 = vmatpush3.bf16.msra.mxu0 %v1950_v40 }
 0x538   :  { %1726 = vmatprep.subr.bf16.mxu0 %v1799_v2 }
 0x53b   :  { %1728 = vmatpush3.bf16.msra.mxu0 %v1966_v46 }
 0x53c   :  { %1729 = vmatprep.subr.bf16.mxu0 %v1799_v2 }
 0x53f   :  { %1731 = vmatpush3.bf16.msra.mxu0 %v1976_v50  ;;  %v165_v50 = vadd.f32 %v2048_v59, %v2081_v20  ;;  %v170_v20 = vadd.f32 %v2079_v19, %v2048_v59 }
 0x5f5   :  { %v763_v9 = vpop.f32.mrb[12].mxu0 }
 0x5f6   :  { %v767_v15 = vadd.f32 %v763_v9, %v160_v4  ;;  %v1437_v21 = vpop.f32.mrb[13].mxu0 }
 0x5f8   :  { %v1018_v28 = vmul.f32 -1.442695, %v767_v15 }
 0x5fa   :  { %1775 = vpow2.f32 %v1018_v28 }
 0x5fb   :  { %1777 = vtanh.f32 %v767_v15 }
 0x604   :  { %v1776_v34 = vpop.eup %1775 }
 0x605   :  { %v771_v18 = vadd.f32 1.0, %v1776_v34  ;;  %v1778_v40 = vpop.eup %1777 }
 0x606   :  { %v775_v25 = vadd.f32 %v1778_v40, %v676_v24 }
 0x607   :  { %1779 = vrcp.f32 %v771_v18 }
 0x611   :  { %v1780_v26 = vpop.eup %1779 }
 0x612   :  { %v776_v46 = vmul.f32 %v1780_v26, %v775_v25 }
 0x614   :  { %1781 = vtanh.f32 %v776_v46 }
 0x61e   :  { %v1782_v2 = vpop.eup %1781 }
 0x61f   :  { %v778_v27 = vmul.f32 %v1782_v2, %v1780_v26 }
 0x621   :  { %1019 = vst [vmem:[%s2198_s6 + $0x28] sm:$0xff] %v778_v27  ;;  %1471 = vmatmul.mubr.f32.vlgmr.msra.gmra.mrb[6].mxu1 %v778_v27 }
 0x6f4   :  { %v865_v17 = vpop.f32.mrb[6].mxu1 }
 0x6f5   :  { %v869_v29 = vadd.f32 %v865_v17, %v165_v50  ;;  %v1472_v30 = vpop.f32.mrb[7].mxu1 }
 0x6f7   :  { %v1020_v31 = vmul.f32 -1.442695, %v869_v29 }
 0x6f9   :  { %1783 = vpow2.f32 %v1020_v31 }
 0x6fa   :  { %1785 = vtanh.f32 %v869_v29 }
 0x703   :  { %v1784_v32 = vpop.eup %1783 }
 0x704   :  { %v873_v33 = vadd.f32 1.0, %v1784_v32  ;;  %v1786_v35 = vpop.eup %1785 }
 0x705   :  { %v877_v36 = vadd.f32 %v1786_v35, %v778_v27 }
 0x706   :  { %1787 = vrcp.f32 %v873_v33 }
 0x710   :  { %v1788_v37 = vpop.eup %1787 }
 0x711   :  { %v878_v38 = vmul.f32 %v1788_v37, %v877_v36 }
 0x713   :  { %1789 = vtanh.f32 %v878_v38 }
 0x71d   :  { %v1790_v39 = vpop.eup %1789 }
 0x71e   :  { %v880_v41 = vmul.f32 %v1790_v39, %v1788_v37 }
 0x720   :  { %1021 = vst [vmem:[%s2198_s6 + $0x30] sm:$0xff] %v880_v41  ;;  %1506 = vmatmul.mubr.f32.vlgmr.msra.gmra.mrb[14].mxu0 %v880_v41 }
 0x7f3   :  { %v967_v42 = vpop.f32.mrb[14].mxu0 }
 0x7f4   :  { %v971_v43 = vadd.f32 %v967_v42, %v170_v20  ;;  %v1507_v44 = vpop.f32.mrb[15].mxu0 }
 0x7f6   :  { %v1022_v45 = vmul.f32 -1.442695, %v971_v43 }
 0x7f8   :  { %1791 = vpow2.f32 %v1022_v45 }
 0x7f9   :  { %1793 = vtanh.f32 %v971_v43 }
 0x802   :  { %v1792_v47 = vpop.eup %1791 }
 0x803   :  { %v975_v48 = vadd.f32 1.0, %v1792_v47  ;;  %v1794_v49 = vpop.eup %1793 }
 0x804   :  { %v979_v51 = vadd.f32 %v1794_v49, %v880_v41 }
 0x805   :  { %1795 = vrcp.f32 %v975_v48 }
 0x80f   :  { %v1796_v52 = vpop.eup %1795 }
 0x810   :  { %v980_v53 = vmul.f32 %v1796_v52, %v979_v51 }
 0x812   :  { %1797 = vtanh.f32 %v980_v53  ;;  %988 = vst [vmem:[%s2199_s8] sm:$0xff] %v980_v53 }
 0x81c   :  { %v1798_v54 = vpop.eup %1797 }
 0x81d   :  { %v982_v59 = vmul.f32 %v1798_v54, %v1796_v52 }
 0x81f   :  { %1023 = vst [vmem:[%s2198_s6 + $0x38] sm:$0xff] %v982_v59  ;;  %987 = vst [vmem:[%s2200_s7] sm:$0xff] %v982_v59 }

</bundles_post_ra>
